<compile_context>
chip_gen: v5e
topology: v5e:2x2
jax: 0.10.0
libtpu: 0.0.40
codegen_flags: <defaults>
</compile_context>

<pallas_src>
import functools
import math

import jax
import jax.numpy as jnp
from jax import lax
from jax.experimental import pallas as pl
from jax.experimental.pallas import tpu as pltpu


_INV_SQRT2 = 0.7071067811865476


def _gelu_exact_f32(h):
    # Exact (erf) GELU == torch.nn.GELU() default == jax.nn.gelu(approximate=False).
    # TODO(synk): switch to the tanh approximation (single EUP op, off the VALU
    # slots) if bit-parity with torch's default GELU is not required.
    return 0.5 * h * (1.0 + lax.erf(h * jnp.float32(_INV_SQRT2)))


def _ffn_kernel_resident(x_ref, w1_ref, b1_ref, w2_ref, b2_ref, o_ref, acc_ref,
                         *, ck, n_chunks, matmul_dtype):
    """Weights resident in VMEM; hidden dim chunked in-kernel (`ck` lanes)."""
    acc_ref[...] = jnp.zeros_like(acc_ref)

    x = x_ref[...]
    if matmul_dtype is not None:
        x = x.astype(matmul_dtype)

    def body(c, carry):
        start = pl.multiple_of(c * ck, 128)
        w1c = w1_ref[:, pl.ds(start, ck)]
        if matmul_dtype is not None:
            w1c = w1c.astype(matmul_dtype)
        h = jnp.dot(x, w1c, preferred_element_type=jnp.float32)
        h = h + b1_ref[:, pl.ds(start, ck)].astype(jnp.float32)
        h = _gelu_exact_f32(h)
        w2c = w2_ref[pl.ds(start, ck), :]
        if matmul_dtype is not None:
            w2c = w2c.astype(matmul_dtype)
        h = h.astype(w2c.dtype)
        acc_ref[...] += jnp.dot(h, w2c, preferred_element_type=jnp.float32)
        return carry

    lax.fori_loop(0, n_chunks, body, 0, unroll=min(n_chunks, 8))

    o_ref[...] = (acc_ref[...] + b2_ref[...].astype(jnp.float32)).astype(o_ref.dtype)


def _ffn_kernel_streaming(x_ref, w1_ref, b1_ref, w2_ref, b2_ref, o_ref, acc_ref,
                          *, matmul_dtype):
    """Inner (hidden) dimension is a grid axis; weight blocks stream from HBM."""
    k = pl.program_id(1)

    @pl.when(k == 0)
    def _():
        acc_ref[...] = jnp.zeros_like(acc_ref)

    x = x_ref[...]
    w1 = w1_ref[...]
    w2 = w2_ref[...]
    if matmul_dtype is not None:
        x = x.astype(matmul_dtype)
        w1 = w1.astype(matmul_dtype)
        w2 = w2.astype(matmul_dtype)

    h = jnp.dot(x, w1, preferred_element_type=jnp.float32)
    h = h + b1_ref[...].astype(jnp.float32)
    h = _gelu_exact_f32(h)
    h = h.astype(w2.dtype)
    acc_ref[...] += jnp.dot(h, w2, preferred_element_type=jnp.float32)

    @pl.when(k == pl.num_programs(1) - 1)
    def _():
        o_ref[...] = (acc_ref[...] + b2_ref[...].astype(jnp.float32)).astype(o_ref.dtype)


def _round_up(n, m):
    return ((n + m - 1) // m) * m


def _sublane_multiple(dtype):
    itemsize = jnp.dtype(dtype).itemsize
    if itemsize >= 4:
        return 8
    if itemsize == 2:
        return 16
    return 32


def _vmem_capacity_bytes():
    try:
        cap = int(pltpu.get_tpu_info().vmem_capacity_bytes)
        if cap > 0:
            return cap
    except Exception:
        pass
    return 64 << 20  # conservative fallback (v7x per-TensorCore VMEM)


@functools.partial(jax.jit, static_argnames=("tm", "matmul_dtype", "force_streaming"))
def feed_forward_network(x, w1, b1, w2, b2, *, tm=None, matmul_dtype=None,
                         force_streaming=False):
    """x: [..., dim]; w1 [dim, inner], b1 [inner], w2 [inner, dim], b2 [dim]."""
    orig_shape = x.shape
    dim = orig_shape[-1]
    inner = w1.shape[1]
    x2d = x.reshape(-1, dim)
    m = x2d.shape[0]

    bytes_x = jnp.dtype(x.dtype).itemsize
    bytes_w = jnp.dtype(w1.dtype).itemsize

    # Lane-dense feature axes: pad dim / inner up to multiples of 128.
    dim_p = _round_up(dim, 128)
    inner_p = _round_up(inner, 128)

    # Hidden-dim chunk: largest multiple of 128 <= 512 that divides inner_p.
    ck = math.gcd(inner_p, 512)
    n_chunks = inner_p // ck

    # Generation-aware VMEM budget (128 MiB on v5e/v6e, 64 MiB per TC on v7x).
    cap = _vmem_capacity_bytes()
    headroom = (12 << 20) if cap <= (64 << 20) else (16 << 20)
    budget = cap - headroom

    w_res = (2 * dim_p * inner_p + inner_p + dim_p) * bytes_w
    streaming = bool(force_streaming) or (w_res > int(0.6 * budget))

    def est_vmem(t):
        acc = t * dim_p * 4                                    # f32 accumulator scratch
        act = 4 * t * dim_p * bytes_x                          # x/out tiles, double-buffered
        interm = 2 * t * ck * 4                                # live f32 GELU chunk
        if streaming:
            w = 2 * (2 * dim_p * ck + ck + dim_p) * bytes_w    # streamed blocks, 2 buffers
        else:
            w = w_res                                          # resident, single-buffered
        return acc + act + interm + w

    sub = _sublane_multiple(x.dtype)
    if tm is None:
        # Target a few MiB per activation tile so small-dim (mem-bound) shapes
        # still get tall row tiles and amortize per-grid-step overhead.
        target_tile_bytes = 4 << 20
        tm = max(sub, min(2048, target_tile_bytes // (dim_p * bytes_x)))
    tm = _round_up(min(int(tm), _round_up(m, sub)), sub)
    while tm > sub and est_vmem(tm) > budget:
        tm = _round_up(max(sub, tm // 2), sub)

    m_p = _round_up(m, tm)

    # Zero padding is exact for linear -> GELU -> linear (gelu(0) == 0);
    # only materialize padded copies when actually needed.
    x_pad = x2d
    if m_p != m or dim_p != dim:
        x_pad = jnp.pad(x2d, ((0, m_p - m), (0, dim_p - dim)))
    w1_p = w1 if (dim_p == dim and inner_p == inner) else jnp.pad(
        w1, ((0, dim_p - dim), (0, inner_p - inner)))
    w2_p = w2 if (dim_p == dim and inner_p == inner) else jnp.pad(
        w2, ((0, inner_p - inner), (0, dim_p - dim)))
    b1_p = (b1 if inner_p == inner else jnp.pad(b1, (0, inner_p - inner))).reshape(1, inner_p)
    b2_p = (b2 if dim_p == dim else jnp.pad(b2, (0, dim_p - dim))).reshape(1, dim_p)

    n_row_tiles = m_p // tm
    vmem_limit = int(min(max(int(est_vmem(tm) * 1.5), 32 << 20), cap - (8 << 20)))

    cost = pl.CostEstimate(
        flops=int(4 * m_p * dim_p * inner_p),
        transcendentals=int(m_p * inner_p),
        bytes_accessed=int(2 * m_p * dim_p * bytes_x
                           + w_res * (n_row_tiles if streaming else 1)),
    )

    if streaming:
        grid = (n_row_tiles, n_chunks)
        kernel = functools.partial(_ffn_kernel_streaming, matmul_dtype=matmul_dtype)
        in_specs = [
            pl.BlockSpec((tm, dim_p), lambda i, k: (i, 0)),    # x row tile (held across k)
            pl.BlockSpec((dim_p, ck), lambda i, k: (0, k)),    # W1 column block (streamed)
            pl.BlockSpec((1, ck), lambda i, k: (0, k)),        # b1 block
            pl.BlockSpec((ck, dim_p), lambda i, k: (k, 0)),    # W2 row block (streamed)
            pl.BlockSpec((1, dim_p), lambda i, k: (0, 0)),     # b2
        ]
        out_specs = pl.BlockSpec((tm, dim_p), lambda i, k: (i, 0))
        dims = ("parallel", "arbitrary")
    else:
        grid = (n_row_tiles,)
        resident = pl.Buffered(1)  # block index never changes -> single buffer
        kernel = functools.partial(_ffn_kernel_resident, ck=ck, n_chunks=n_chunks,
                                   matmul_dtype=matmul_dtype)
        in_specs = [
            pl.BlockSpec((tm, dim_p), lambda i: (i, 0)),                           # x row tile
            pl.BlockSpec((dim_p, inner_p), lambda i: (0, 0), pipeline_mode=resident),  # W1
            pl.BlockSpec((1, inner_p), lambda i: (0, 0), pipeline_mode=resident),      # b1
            pl.BlockSpec((inner_p, dim_p), lambda i: (0, 0), pipeline_mode=resident),  # W2
            pl.BlockSpec((1, dim_p), lambda i: (0, 0), pipeline_mode=resident),        # b2
        ]
        out_specs = pl.BlockSpec((tm, dim_p), lambda i: (i, 0))
        dims = ("parallel",)

    out = pl.pallas_call(
        kernel,
        out_shape=jax.ShapeDtypeStruct((m_p, dim_p), x.dtype),
        grid_spec=pltpu.PrefetchScalarGridSpec(
            num_scalar_prefetch=0,
            grid=grid,
            in_specs=in_specs,
            out_specs=out_specs,
            scratch_shapes=[pltpu.VMEM((tm, dim_p), jnp.float32)],
        ),
        compiler_params=pltpu.CompilerParams(
            dimension_semantics=dims,
            vmem_limit_bytes=vmem_limit,
        ),
        cost_estimate=cost,
    )(x_pad, w1_p, b1_p, w2_p, b2_p)

    if m_p != m or dim_p != dim:
        out = out[:m, :dim]
    return out.reshape(orig_shape)


def _reference_ffn(x, w1, b1, w2, b2):
    h = jnp.einsum("...d,de->...e", x.astype(jnp.float32), w1.astype(jnp.float32)) + b1
    h = jax.nn.gelu(h, approximate=False)
    o = jnp.einsum("...e,ed->...d", h, w2.astype(jnp.float32)) + b2
    return o.astype(x.dtype)


def _make_params(key, dim, inner, dtype=jnp.float32):
    # Deterministic PyTorch-Linear-style uniform init.
    k1, k2, k3, k4 = jax.random.split(key, 4)
    bound1 = 1.0 / (dim ** 0.5)
    bound2 = 1.0 / (inner ** 0.5)
    w1 = jax.random.uniform(k1, (dim, inner), dtype, -bound1, bound1)
    b1 = jax.random.uniform(k2, (inner,), dtype, -bound1, bound1)
    w2 = jax.random.uniform(k3, (inner, dim), dtype, -bound2, bound2)
    b2 = jax.random.uniform(k4, (dim,), dtype, -bound2, bound2)
    return w1, b1, w2, b2


if __name__ == "__main__":
    key = jax.random.PRNGKey(0)

    # Case 1: module-native small shape [B, C, H, W] = [2, 4, 8, 16], mult=4.
    B, C, H, dim = 2, 4, 8, 16
    inner = dim * 4
    kx, kp = jax.random.split(key)
    x = jax.random.normal(kx, (B, C, H, dim), dtype=jnp.float32)
    w1, b1, w2, b2 = _make_params(kp, dim, inner)

    out = jax.block_until_ready(feed_forward_network(x, w1, b1, w2, b2))
    ref = _reference_ffn(x, w1, b1, w2, b2)
    assert out.shape == x.shape and out.dtype == x.dtype
    assert jnp.allclose(out, ref, atol=1e-5, rtol=1e-5), "resident path mismatch"

    # Case 2: larger dim exercises the multi-chunk resident loop and the
    # weight-streaming (inner grid axis) path.
    dim2 = 256
    inner2 = dim2 * 4
    kx2, kp2 = jax.random.split(kp)
    x2 = jax.random.normal(kx2, (2, 4, 8, dim2), dtype=jnp.float32)
    w1b, b1b, w2b, b2b = _make_params(kp2, dim2, inner2)
    ref2 = _reference_ffn(x2, w1b, b1b, w2b, b2b)

    out2 = jax.block_until_ready(feed_forward_network(x2, w1b, b1b, w2b, b2b))
    assert jnp.allclose(out2, ref2, atol=1e-3, rtol=1e-3), "chunked resident mismatch"

    out3 = jax.block_until_ready(
        feed_forward_network(x2, w1b, b1b, w2b, b2b, force_streaming=True))
    assert jnp.allclose(out3, ref2, atol=1e-3, rtol=1e-3), "streaming path mismatch"

    print("KERNEL_OK")
</pallas_src>

<mosaic_0001>
module attributes {stable_mosaic.version = 11 : i64} {
  func.func @_ffn_kernel_resident(%arg0: i32, %arg1: memref<64x128xf32, #tpu.memory_space<vmem>>, %arg2: memref<128x128xf32, #tpu.memory_space<vmem>>, %arg3: memref<1x128xf32, #tpu.memory_space<vmem>>, %arg4: memref<128x128xf32, #tpu.memory_space<vmem>>, %arg5: memref<1x128xf32, #tpu.memory_space<vmem>>, %arg6: memref<64x128xf32, #tpu.memory_space<vmem>>, %arg7: memref<64x128xf32, #tpu.memory_space<vmem>>) attributes {dimension_semantics = [#tpu.dimension_semantics<parallel>], iteration_bounds = array<i64: 1>, scalar_prefetch = 0 : i64, scratch_operands = 1 : i64, tpu.core_type = #tpu.core_type<tc>, window_params = [{transform_indices = @transform_0, window_bounds = array<i64: 64, 128>}, {pipeline_mode = #tpu.pipeline_mode<synchronous>, transform_indices = @transform_1, window_bounds = array<i64: 128, 128>}, {pipeline_mode = #tpu.pipeline_mode<synchronous>, transform_indices = @transform_2, window_bounds = array<i64: 1, 128>}, {pipeline_mode = #tpu.pipeline_mode<synchronous>, transform_indices = @transform_3, window_bounds = array<i64: 128, 128>}, {pipeline_mode = #tpu.pipeline_mode<synchronous>, transform_indices = @transform_4, window_bounds = array<i64: 1, 128>}, {transform_indices = @transform_5, window_bounds = array<i64: 64, 128>}]} {
    %cst = arith.constant 0.000000e+00 : f32
    %0 = vector.broadcast %cst : f32 to vector<64x128xf32>
    %c0 = arith.constant 0 : index
    %c0_0 = arith.constant 0 : index
    %1 = vector.load %arg7[%c0, %c0_0] : memref<64x128xf32, #tpu.memory_space<vmem>>, vector<64x128xf32>
    tpu.vector_store %arg7[%c0, %c0_0], %0 {strides = array<i32>} : memref<64x128xf32, #tpu.memory_space<vmem>>, vector<64x128xf32>,
    %c0_1 = arith.constant 0 : index
    %c0_2 = arith.constant 0 : index
    %2 = vector.load %arg1[%c0_1, %c0_2] : memref<64x128xf32, #tpu.memory_space<vmem>>, vector<64x128xf32>
    %c0_i32 = arith.constant 0 : i32
    %c128_i32 = arith.constant 128 : i32
    %3 = arith.muli %c0_i32, %c128_i32 : i32
    %4 = tpu.assume_multiple %3, 128 : i32
    %c0_3 = arith.constant 0 : index
    %5 = arith.index_cast %4 : i32 to index
    %6 = vector.load %arg2[%c0_3, %5] : memref<128x128xf32, #tpu.memory_space<vmem>>, vector<128x128xf32>
    %cst_4 = arith.constant dense<0.000000e+00> : vector<64x128xf32>
    %7 = tpu.matmul %2, %6, %cst_4 {dimension_numbers = #tpu.dot_dimension_numbers<[1], [0], [0], [1], [0, 0, 1, 1], [], []>} : vector<64x128xf32>, vector<128x128xf32>, vector<64x128xf32> -> vector<64x128xf32>
    %c0_5 = arith.constant 0 : index
    %8 = arith.index_cast %4 : i32 to index
    %9 = vector.load %arg3[%c0_5, %8] : memref<1x128xf32, #tpu.memory_space<vmem>>, vector<1x128xf32>
    %10 = vector.broadcast %9 : vector<1x128xf32> to vector<64x128xf32>
    %11 = arith.addf %7, %10 : vector<64x128xf32>
    %cst_6 = arith.constant 5.000000e-01 : f32
    %12 = vector.broadcast %cst_6 : f32 to vector<64x128xf32>
    %13 = arith.mulf %12, %11 : vector<64x128xf32>
    %cst_7 = arith.constant 0.707106769 : f32
    %14 = vector.broadcast %cst_7 : f32 to vector<64x128xf32>
    %15 = arith.mulf %11, %14 : vector<64x128xf32>
    %16 = math.erf %15 : vector<64x128xf32>
    %cst_8 = arith.constant 1.000000e+00 : f32
    %17 = vector.broadcast %cst_8 : f32 to vector<64x128xf32>
    %18 = arith.addf %17, %16 : vector<64x128xf32>
    %19 = arith.mulf %13, %18 : vector<64x128xf32>
    %20 = arith.index_cast %4 : i32 to index
    %c0_9 = arith.constant 0 : index
    %21 = vector.load %arg4[%20, %c0_9] : memref<128x128xf32, #tpu.memory_space<vmem>>, vector<128x128xf32>
    %c0_10 = arith.constant 0 : index
    %c0_11 = arith.constant 0 : index
    %22 = vector.load %arg7[%c0_10, %c0_11] : memref<64x128xf32, #tpu.memory_space<vmem>>, vector<64x128xf32>
    %cst_12 = arith.constant dense<0.000000e+00> : vector<64x128xf32>
    %23 = tpu.matmul %19, %21, %cst_12 {dimension_numbers = #tpu.dot_dimension_numbers<[1], [0], [0], [1], [0, 0, 1, 1], [], []>} : vector<64x128xf32>, vector<128x128xf32>, vector<64x128xf32> -> vector<64x128xf32>
    %24 = arith.addf %22, %23 : vector<64x128xf32>
    %c0_13 = arith.constant 0 : index
    %c0_14 = arith.constant 0 : index
    %25 = vector.load %arg7[%c0_13, %c0_14] : memref<64x128xf32, #tpu.memory_space<vmem>>, vector<64x128xf32>
    tpu.vector_store %arg7[%c0_13, %c0_14], %24 {strides = array<i32>} : memref<64x128xf32, #tpu.memory_space<vmem>>, vector<64x128xf32>,
    %c1_i32 = arith.constant 1 : i32
    %c0_15 = arith.constant 0 : index
    %c0_16 = arith.constant 0 : index
    %26 = vector.load %arg7[%c0_15, %c0_16] : memref<64x128xf32, #tpu.memory_space<vmem>>, vector<64x128xf32>
    %c0_17 = arith.constant 0 : index
    %c0_18 = arith.constant 0 : index
    %27 = vector.load %arg5[%c0_17, %c0_18] : memref<1x128xf32, #tpu.memory_space<vmem>>, vector<1x128xf32>
    %28 = vector.broadcast %27 : vector<1x128xf32> to vector<64x128xf32>
    %29 = arith.addf %26, %28 : vector<64x128xf32>
    %c0_19 = arith.constant 0 : index
    %c0_20 = arith.constant 0 : index
    %30 = vector.load %arg6[%c0_19, %c0_20] : memref<64x128xf32, #tpu.memory_space<vmem>>, vector<64x128xf32>
    tpu.vector_store %arg6[%c0_19, %c0_20], %29 {strides = array<i32>} : memref<64x128xf32, #tpu.memory_space<vmem>>, vector<64x128xf32>,
    return
  }
  func.func @transform_0(%arg0: i32) -> (i32, i32) {
    %c0_i32 = arith.constant 0 : i32
    %c0_i32_0 = arith.constant 0 : i32
    return %arg0, %c0_i32 : i32, i32
  }
  func.func @transform_1(%arg0: i32) -> (i32, i32) {
    %c0_i32 = arith.constant 0 : i32
    %c0_i32_0 = arith.constant 0 : i32
    %c0_i32_1 = arith.constant 0 : i32
    return %c0_i32, %c0_i32_0 : i32, i32
  }
  func.func @transform_2(%arg0: i32) -> (i32, i32) {
    %c0_i32 = arith.constant 0 : i32
    %c0_i32_0 = arith.constant 0 : i32
    %c0_i32_1 = arith.constant 0 : i32
    return %c0_i32, %c0_i32_0 : i32, i32
  }
  func.func @transform_3(%arg0: i32) -> (i32, i32) {
    %c0_i32 = arith.constant 0 : i32
    %c0_i32_0 = arith.constant 0 : i32
    %c0_i32_1 = arith.constant 0 : i32
    return %c0_i32, %c0_i32_0 : i32, i32
  }
  func.func @transform_4(%arg0: i32) -> (i32, i32) {
    %c0_i32 = arith.constant 0 : i32
    %c0_i32_0 = arith.constant 0 : i32
    %c0_i32_1 = arith.constant 0 : i32
    return %c0_i32, %c0_i32_0 : i32, i32
  }
  func.func @transform_5(%arg0: i32) -> (i32, i32) {
    %c0_i32 = arith.constant 0 : i32
    %c0_i32_0 = arith.constant 0 : i32
    return %arg0, %c0_i32 : i32, i32
  }
}

</mosaic_0001>

<bundles_post_ra>
// kernel: feed_forward_network.1
= control target key start
LH: loop header
LB: loop body
LE: loop exit
PB: predicated region body
PF: predicated region fallthrough
CT: control target
= control target key end

     0   :  { %s1077_s0 = inlined_call_operand.vmem [shape: f32[64,128], index: 0, kind: input, shape index: {}]   ;;  %s1078_s1 = inlined_call_operand.vmem [shape: f32[128,128], index: 1, kind: input, shape index: {}]   ;;  %s1079_s2 = inlined_call_operand.vmem [shape: f32[1,128], index: 2, kind: input, shape index: {}]   ;;  %s1080_s3 = inlined_call_operand.vmem [shape: f32[128,128], index: 3, kind: input, shape index: {}]   ;;  %s1081_s4 = inlined_call_operand.vmem [shape: f32[1,128], index: 4, kind: input, shape index: {}]   ;;  %s1082_s5 = inlined_call_operand.hbm [shape: f32[64,128], index: 5, kind: output, shape index: {}]  }
   0x1   :  { %v52_v0 = vld [vmem:[%s1078_s1 + $0x78] sm:$0xff]  ;;  %v51_v1 = vld [vmem:[%s1078_s1 + $0x70] sm:$0xff]  ;;  %v50_v2 = vld [vmem:[%s1078_s1 + $0x68] sm:$0xff] }
   0x2   :  { %57 = vmatpush.msra.mxu0 %v52_v0  ;;  %585 = vmatpush.msra.mxu2 %v52_v0  ;;  %v49_v3 = vld [vmem:[%s1078_s1 + $0x60] sm:$0xff]  ;;  %v48_v4 = vld [vmem:[%s1078_s1 + $0x58] sm:$0xff] }
   0x4   :  { %58 = vmatpush.msra.mxu0 %v51_v1  ;;  %586 = vmatpush.msra.mxu2 %v51_v1 }
   0x6   :  { %59 = vmatpush.msra.mxu0 %v50_v2  ;;  %587 = vmatpush.msra.mxu2 %v50_v2 }
   0x8   :  { %60 = vmatpush.msra.mxu0 %v49_v3  ;;  %588 = vmatpush.msra.mxu2 %v49_v3 }
   0x9   :  { %10 = vsyncpa [#allocation4], 0  ;;  %v47_v5 = vld [vmem:[%s1078_s1 + $0x50] sm:$0xff]  ;;  %v46_v6 = vld [vmem:[%s1078_s1 + $0x48] sm:$0xff]  ;;  %s565_s24 = sshll.u32 %s1082_s5, 4  ;;  %s665_s25 = smov 128   ;;  %s566_s24 = int_to_ptr.hbm [resolvable:$true] %s565_s24 }
   0xa   :  { %61 = vmatpush.msra.mxu0 %v48_v4  ;;  %589 = vmatpush.msra.mxu2 %v48_v4  ;;  %v45_v7 = vld [vmem:[%s1078_s1 + $0x40] sm:$0xff]  ;;  %v44_v8 = vld [vmem:[%s1078_s1 + $0x38] sm:$0xff]  ;;  %v43_v9 = vld [vmem:[%s1078_s1 + $0x30] sm:$0xff] }
   0xb   :  { %v42_v10 = vld [vmem:[%s1078_s1 + $0x28] sm:$0xff]  ;;  %v41_v11 = vld [vmem:[%s1078_s1 + $0x20] sm:$0xff]  ;;  %v40_v12 = vld [vmem:[%s1078_s1 + $0x18] sm:$0xff] }
   0xc   :  { %62 = vmatpush.msra.mxu0 %v47_v5  ;;  %590 = vmatpush.msra.mxu2 %v47_v5  ;;  %v39_v13 = vld [vmem:[%s1078_s1 + $0x10] sm:$0xff]  ;;  %v38_v14 = vld [vmem:[%s1078_s1 + $0x8] sm:$0xff]  ;;  %v37_v15 = vld [vmem:[%s1078_s1] sm:$0xff] }
   0xd   :  { %v29_v16 = vld [vmem:[%s1077_s0] sm:$0xff]  ;;  %v30_v18 = vld [vmem:[%s1077_s0 + $0x8] sm:$0xff]  ;;  %v31_v20 = vld [vmem:[%s1077_s0 + $0x10] sm:$0xff] }
   0xe   :  { %63 = vmatpush.msra.mxu0 %v46_v6  ;;  %591 = vmatpush.msra.mxu2 %v46_v6  ;;  %v33_v17 = vld [vmem:[%s1077_s0 + $0x20] sm:$0xff]  ;;  %v34_v19 = vld [vmem:[%s1077_s0 + $0x28] sm:$0xff]  ;;  %v35_v21 = vld [vmem:[%s1077_s0 + $0x30] sm:$0xff] }
   0xf   :  { %v32_v22 = vld [vmem:[%s1077_s0 + $0x18] sm:$0xff]  ;;  %v464_v25 = vld [vmem:[%s1080_s3 + $0x70] sm:$0xff]  ;;  %v463_v26 = vld [vmem:[%s1080_s3 + $0x68] sm:$0xff] }
  0x10   :  { %64 = vmatpush.msra.mxu0 %v45_v7  ;;  %592 = vmatpush.msra.mxu2 %v45_v7  ;;  %v36_v23 = vld [vmem:[%s1077_s0 + $0x38] sm:$0xff]  ;;  %v781_v27 = vld [vmem:[%s1079_s2] ss:$0 sm:$0xff]  ;;  %v460_v32 = vld [vmem:[%s1080_s3 + $0x50] sm:$0xff]  ;;  %s666_s2 = smov 8  }
  0x11   :  { %v465_v24 = vld [vmem:[%s1080_s3 + $0x78] sm:$0xff]  ;;  %v462_v28 = vld [vmem:[%s1080_s3 + $0x60] sm:$0xff]  ;;  %v459_v34 = vld [vmem:[%s1080_s3 + $0x48] sm:$0xff] }
  0x12   :  { %65 = vmatpush.msra.mxu0 %v44_v8  ;;  %593 = vmatpush.msra.mxu2 %v44_v8  ;;  %v461_v30 = vld [vmem:[%s1080_s3 + $0x58] sm:$0xff]  ;;  %v458_v37 = vld [vmem:[%s1080_s3 + $0x40] sm:$0xff]  ;;  %v456_v45 = vld [vmem:[%s1080_s3 + $0x30] sm:$0xff] }
  0x13   :  { %474 = vmatpush.msra.mxu1 %v465_v24  ;;  %601 = vmatpush.msra.mxu3 %v465_v24  ;;  %v457_v41 = vld [vmem:[%s1080_s3 + $0x38] sm:$0xff]  ;;  %v455_v50 = vld [vmem:[%s1080_s3 + $0x28] sm:$0xff]  ;;  %v454_v56 = vld [vmem:[%s1080_s3 + $0x20] sm:$0xff] }
  0x14   :  { %66 = vmatpush.msra.mxu0 %v43_v9  ;;  %594 = vmatpush.msra.mxu2 %v43_v9  ;;  %v453_v63 = vld [vmem:[%s1080_s3 + $0x18] sm:$0xff]  ;;  %v452_v6 = vld [vmem:[%s1080_s3 + $0x10] sm:$0xff] }
  0x15   :  { %475 = vmatpush.msra.mxu1 %v464_v25  ;;  %602 = vmatpush.msra.mxu3 %v464_v25 }
  0x16   :  { %67 = vmatpush.msra.mxu0 %v42_v10  ;;  %595 = vmatpush.msra.mxu2 %v42_v10 }
  0x17   :  { %476 = vmatpush.msra.mxu1 %v463_v26  ;;  %603 = vmatpush.msra.mxu3 %v463_v26 }
  0x18   :  { %68 = vmatpush.msra.mxu0 %v41_v11  ;;  %596 = vmatpush.msra.mxu2 %v41_v11 }
  0x19   :  { %477 = vmatpush.msra.mxu1 %v462_v28  ;;  %604 = vmatpush.msra.mxu3 %v462_v28 }
  0x1a   :  { %69 = vmatpush.msra.mxu0 %v40_v12  ;;  %597 = vmatpush.msra.mxu2 %v40_v12 }
  0x1b   :  { %478 = vmatpush.msra.mxu1 %v461_v30  ;;  %605 = vmatpush.msra.mxu3 %v461_v30 }
  0x1c   :  { %70 = vmatpush.msra.mxu0 %v39_v13  ;;  %598 = vmatpush.msra.mxu2 %v39_v13  ;;  %v451_v13 = vld [vmem:[%s1080_s3 + $0x8] sm:$0xff] }
  0x1d   :  { %479 = vmatpush.msra.mxu1 %v460_v32  ;;  %606 = vmatpush.msra.mxu3 %v460_v32 }
  0x1e   :  { %71 = vmatpush.msra.mxu0 %v38_v14  ;;  %599 = vmatpush.msra.mxu2 %v38_v14 }
  0x1f   :  { %480 = vmatpush.msra.mxu1 %v459_v34  ;;  %607 = vmatpush.msra.mxu3 %v459_v34 }
  0x20   :  { %72 = vmatpush.msra.mxu0 %v37_v15  ;;  %600 = vmatpush.msra.mxu2 %v37_v15 }
  0x21   :  { %73 = vmatmul.f32.vlgmr.msra.gmra.mxu0 %v29_v16  ;;  %85 = vmatmul.f32.vlgmr.msra.gmra.mxu2 %v33_v17 }
  0x22   :  { %481 = vmatpush.msra.mxu1 %v458_v37  ;;  %608 = vmatpush.msra.mxu3 %v458_v37 }
  0x24   :  { %482 = vmatpush.msra.mxu1 %v457_v41  ;;  %609 = vmatpush.msra.mxu3 %v457_v41 }
  0x26   :  { %483 = vmatpush.msra.mxu1 %v456_v45  ;;  %610 = vmatpush.msra.mxu3 %v456_v45 }
  0x28   :  { %484 = vmatpush.msra.mxu1 %v455_v50  ;;  %611 = vmatpush.msra.mxu3 %v455_v50 }
  0x29   :  { %76 = vmatmul.f32.gmra.mxu0 %v30_v18  ;;  %88 = vmatmul.f32.gmra.mxu2 %v34_v19 }
  0x2a   :  { %485 = vmatpush.msra.mxu1 %v454_v56  ;;  %612 = vmatpush.msra.mxu3 %v454_v56 }
  0x2c   :  { %486 = vmatpush.msra.mxu1 %v453_v63  ;;  %613 = vmatpush.msra.mxu3 %v453_v63 }
  0x2e   :  { %487 = vmatpush.msra.mxu1 %v452_v6  ;;  %614 = vmatpush.msra.mxu3 %v452_v6 }
  0x30   :  { %488 = vmatpush.msra.mxu1 %v451_v13  ;;  %615 = vmatpush.msra.mxu3 %v451_v13 }
  0x31   :  { %79 = vmatmul.f32.gmra.mxu0 %v31_v20  ;;  %91 = vmatmul.f32.gmra.mxu2 %v35_v21  ;;  %v450_v20 = vld [vmem:[%s1080_s3] sm:$0xff] }
  0x32   :  { %489 = vmatpush.msra.mxu1 %v450_v20  ;;  %616 = vmatpush.msra.mxu3 %v450_v20 }
  0x39   :  { %82 = vmatmul.f32.gmra.mxu0 %v32_v22  ;;  %94 = vmatmul.f32.gmra.mxu2 %v36_v23 }
  0x9e   :  { %v74_v29 = vpop.f32.mrf.mxu0 }
  0x9f   :  { %v790_v31 = vadd.f32 %v781_v27, %v74_v29 }
  0xa1   :  { %v796_v33 = vmul.f32 0.70710677, %v790_v31 }
  0xa3   :  { %v114_v35 = vmul.f32 %v796_v33, %v796_v33 }
  0xa4   :  { %v86_v36 = vpop.f32.mrf.mxu2 }
  0xa5   :  { %v806_v38 = vmin.f32 %v114_v35, 16.0  ;;  %v809_v39 = vadd.f32 %v781_v27, %v86_v36 }
  0xa6   :  { %v77_v40 = vpop.f32.mrf.mxu0 }
  0xa7   :  { %v116_v42 = vmul.f32 2.1237322e-06, %v806_v38  ;;  %v816_v43 = vmul.f32 0.70710677, %v809_v39  ;;  %v819_v44 = vadd.f32 %v781_v27, %v77_v40  ;;  %v127_v46 = vmul.f32 3.8918573e-05, %v806_v38 }
  0xa9   :  { %v117_v47 = vadd.f32 0.00028619796, %v116_v42  ;;  %v274_v48 = vmul.f32 %v816_v43, %v816_v43  ;;  %v828_v49 = vmul.f32 0.70710677, %v819_v44  ;;  %v128_v51 = vadd.f32 0.001143296, %v127_v46 }
  0xab   :  { %v118_v52 = vmul.f32 %v117_v47, %v806_v38  ;;  %v834_v53 = vmin.f32 %v274_v48, 16.0  ;;  %v154_v54 = vmul.f32 %v828_v49, %v828_v49  ;;  %v129_v57 = vmul.f32 %v128_v51, %v806_v38 }
  0xac   :  { %v89_v55 = vpop.f32.mrf.mxu2 }
  0xad   :  { %v119_v58 = vadd.f32 0.0036580483, %v118_v52  ;;  %v276_v59 = vmul.f32 2.1237322e-06, %v834_v53  ;;  %v843_v60 = vmin.f32 %v154_v54, 16.0  ;;  %v846_v61 = vadd.f32 %v781_v27, %v89_v55 }
  0xae   :  { %v80_v62 = vpop.f32.mrf.mxu0  ;;  %v130_v0 = vadd.f32 0.014752088, %v129_v57  ;;  %v287_v50 = vmul.f32 3.8918573e-05, %v834_v53 }
  0xaf   :  { %v120_v1 = vmul.f32 %v119_v58, %v806_v38  ;;  %v277_v2 = vadd.f32 0.00028619796, %v276_v59  ;;  %v156_v3 = vmul.f32 2.1237322e-06, %v843_v60  ;;  %v854_v4 = vmul.f32 0.70710677, %v846_v61 }
  0xb0   :  { %v857_v5 = vadd.f32 %v781_v27, %v80_v62  ;;  %v131_v7 = vmul.f32 %v130_v0, %v806_v38  ;;  %v167_v59 = vmul.f32 3.8918573e-05, %v843_v60 }
  0xb1   :  { %v121_v8 = vadd.f32 0.05243302, %v120_v1  ;;  %v278_v9 = vmul.f32 %v277_v2, %v834_v53  ;;  %v157_v10 = vadd.f32 0.00028619796, %v156_v3  ;;  %v314_v11 = vmul.f32 %v854_v4, %v854_v4 }
  0xb2   :  { %v867_v12 = vmul.f32 0.70710677, %v857_v5  ;;  %v132_v14 = vadd.f32 0.112945676, %v131_v7  ;;  %v288_v3 = vadd.f32 0.001143296, %v287_v50 }
  0xb3   :  { %v279_v15 = vadd.f32 0.0036580483, %v278_v9  ;;  %v158_v16 = vmul.f32 %v157_v10, %v843_v60  ;;  %v873_v17 = vmin.f32 %v314_v11, 16.0  ;;  %v122_v22 = vmul.f32 %v121_v8, %v806_v38 }
  0xb4   :  { %v194_v18 = vmul.f32 %v867_v12, %v867_v12  ;;  %v92_v19 = vpop.f32.mrf.mxu2  ;;  %v133_v21 = vmul.f32 %v132_v14, %v806_v38 }
  0xb5   :  { %v883_v23 = vadd.f32 %v781_v27, %v92_v19  ;;  %v280_v24 = vmul.f32 %v279_v15, %v834_v53  ;;  %v316_v25 = vmul.f32 2.1237322e-06, %v873_v17  ;;  %v159_v30 = vadd.f32 0.0036580483, %v158_v16 }
  0xb6   :  { %v887_v26 = vmin.f32 %v194_v18, 16.0  ;;  %v83_v28 = vpop.f32.mrf.mxu0  ;;  %v134_v29 = vadd.f32 0.4994258, %v133_v21  ;;  %v123_v37 = vadd.f32 0.18741608, %v122_v22  ;;  %v289_v15 = vmul.f32 %v288_v3, %v834_v53 }
  0xb7   :  { %v317_v32 = vadd.f32 0.00028619796, %v316_v25  ;;  %v891_v35 = vmul.f32 0.70710677, %v883_v23  ;;  %v894_v36 = vadd.f32 %v781_v27, %v83_v28  ;;  %v281_v41 = vadd.f32 0.05243302, %v280_v24 }
  0xb8   :  { %v196_v34 = vmul.f32 2.1237322e-06, %v887_v26  ;;  %v135_v40 = vmul.f32 %v134_v29, %v806_v38  ;;  %v160_v47 = vmul.f32 %v159_v30, %v843_v60  ;;  %v124_v57 = vmul.f32 %v123_v37, %v806_v38 }
  0xb9   :  { %v318_v42 = vmul.f32 %v317_v32, %v873_v17  ;;  %v354_v46 = vmul.f32 %v891_v35, %v891_v35  ;;  %v902_v48 = vmul.f32 0.70710677, %v894_v36  ;;  %v282_v62 = vmul.f32 %v281_v41, %v834_v53 }
  0xba   :  { %v197_v45 = vadd.f32 0.00028619796, %v196_v34  ;;  %v136_v56 = vadd.f32 1.0, %v135_v40  ;;  %v161_v1 = vadd.f32 0.05243302, %v160_v47  ;;  %v928_v19 = vmul.f32 0.5, %v790_v31 }
  0xbb   :  { %v319_v51 = vadd.f32 0.0036580483, %v318_v42  ;;  %v906_v54 = vmin.f32 %v354_v46, 16.0  ;;  %v234_v58 = vmul.f32 %v902_v48, %v902_v48  ;;  %v168_v38 = vadd.f32 0.001143296, %v167_v59 }
  0xbc   :  { %v198_v52 = vmul.f32 %v197_v45, %v887_v26  ;;  %v95_v55 = vpop.f32.mrf.mxu2  ;;  %622 = vrcp.f32 %v136_v56  ;;  %v125_v8 = vadd.f32 1.1283791, %v124_v57  ;;  %v283_v9 = vadd.f32 0.18741608, %v282_v62 }
  0xbd   :  { %v356_v0 = vmul.f32 2.1237322e-06, %v906_v54  ;;  %v915_v2 = vadd.f32 %v781_v27, %v95_v55  ;;  %v320_v6 = vmul.f32 %v319_v51, %v873_v17  ;;  %v918_v7 = vmin.f32 %v234_v58, 16.0 }
  0xbe   :  { %v199_v63 = vadd.f32 0.0036580483, %v198_v52  ;;  %v162_v13 = vmul.f32 %v161_v1, %v843_v60  ;;  %v169_v21 = vmul.f32 %v168_v38, %v843_v60  ;;  %v126_v22 = vmul.f32 %v125_v8, %v796_v33 }
  0xbf   :  { %v357_v11 = vadd.f32 0.00028619796, %v356_v0  ;;  %v923_v14 = vmul.f32 0.70710677, %v915_v2  ;;  %v321_v16 = vadd.f32 0.05243302, %v320_v6  ;;  %v284_v24 = vmul.f32 %v283_v9, %v834_v53 }
  0xc0   :  { %v200_v10 = vmul.f32 %v199_v63, %v887_v26  ;;  %v236_v18 = vmul.f32 2.1237322e-06, %v918_v7  ;;  %v163_v29 = vadd.f32 0.18741608, %v162_v13  ;;  %v290_v34 = vadd.f32 0.014752088, %v289_v15 }
  0xc1   :  { %v358_v28 = vmul.f32 %v357_v11, %v906_v54  ;;  %v394_v30 = vmul.f32 %v923_v14, %v923_v14  ;;  %v322_v37 = vmul.f32 %v321_v16, %v873_v17  ;;  %v146_v40 = vand.u32 2147483647, %v136_v56 }
  0xc2   :  { %v623_v27 = vpop.eup %622  ;;  %v201_v25 = vadd.f32 0.05243302, %v200_v10  ;;  %v237_v31 = vadd.f32 0.00028619796, %v236_v18  ;;  %v148_v41 = vand.u32 2147483648, %v136_v56  ;;  %v291_v33 = vmul.f32 %v290_v34, %v834_v53 }
  0xc3   :  { %v138_v20 = vmul.f32 %v623_v27, %v136_v56  ;;  %vm143_vm0 = vweird.f32 %v623_v27  ;;  %v170_v45 = vadd.f32 0.014752088, %v169_v21  ;;  %v285_v46 = vadd.f32 1.1283791, %v284_v24 }
  0xc4   :  { %v202_v47 = vmul.f32 %v201_v25, %v887_v26  ;;  %v359_v50 = vadd.f32 0.0036580483, %v358_v28  ;;  %vm142_vm1 = vweird.f32 %v136_v56  ;;  %v939_v51 = vmin.f32 %v394_v30, 16.0 }
  0xc5   :  { %v139_v32 = vsub.f32 1.0, %v138_v20  ;;  %v292_v55 = vadd.f32 0.112945676, %v291_v33  ;;  %v171_v57 = vmul.f32 %v170_v45, %v843_v60  ;;  %v323_v58 = vadd.f32 0.18741608, %v322_v37  ;;  %vm144_vm2 = vmor %vm142_vm1, %vm143_vm0 }
  0xc6   :  { %v238_v59 = vmul.f32 %v237_v31, %v918_v7  ;;  %v149_v62 = vor.u32 1.1754944e-38, %v148_v41  ;;  %v327_v63 = vmul.f32 3.8918573e-05, %v873_v17  ;;  %vm147_vm3 = vcmp.eq.f32.partialorder %v146_v40, 8.507059e+37 }
  0xc7   :  { %v140_v42 = vmul.f32 %v623_v27, %v139_v32  ;;  %v293_v1 = vmul.f32 %v292_v55, %v834_v53  ;;  %v172_v3 = vadd.f32 0.112945676, %v171_v57  ;;  %v203_v6 = vadd.f32 0.18741608, %v202_v47 }
  0xc8   :  { %v360_v56 = vmul.f32 %v359_v50, %v906_v54  ;;  %v328_v8 = vadd.f32 0.001143296, %v327_v63  ;;  %v396_v9 = vmul.f32 2.1237322e-06, %v939_v51  ;;  %v164_v15 = vmul.f32 %v163_v29, %v843_v60 }
  0xc9   :  { %v141_v52 = vadd.f32 %v623_v27, %v140_v42  ;;  %v294_v11 = vadd.f32 0.4994258, %v293_v1  ;;  %v173_v13 = vmul.f32 %v172_v3, %v843_v60  ;;  %v324_v16 = vmul.f32 %v323_v58, %v873_v17 }
  0xca   :  { %v207_v18 = vmul.f32 3.8918573e-05, %v887_v26  ;;  %v239_v20 = vadd.f32 0.0036580483, %v238_v59  ;;  %v204_v28 = vmul.f32 %v203_v6, %v887_v26  ;;  %v361_v30 = vadd.f32 0.05243302, %v360_v56 }
  0xcb   :  { %v145_v0 = vsel %vm144_vm2, %v623_v27, %v141_v52  ;;  %v329_v27 = vmul.f32 %v328_v8, %v873_v17  ;;  %v295_v24 = vmul.f32 %v294_v11, %v834_v53  ;;  %v174_v25 = vadd.f32 0.4994258, %v173_v13 }
  0xcc   :  { %v150_v38 = vsel %vm147_vm3, %v149_v62, %v145_v0  ;;  %v208_v32 = vadd.f32 0.001143296, %v207_v18  ;;  %v397_v34 = vadd.f32 0.00028619796, %v396_v9  ;;  %v165_v40 = vadd.f32 1.1283791, %v164_v15 }
  0xcd   :  { %v151_v10 = vmul.f32 %v150_v38, %v126_v22  ;;  %v330_v22 = vadd.f32 0.014752088, %v329_v27  ;;  %v954_v31 = vadd.f32 1.0, %v295_v24  ;;  %v175_v29 = vmul.f32 %v174_v25, %v843_v60 }
  0xce   :  { %v209_v42 = vmul.f32 %v208_v32, %v887_v26  ;;  %v367_v33 = vmul.f32 3.8918573e-05, %v906_v54  ;;  %v325_v53 = vadd.f32 1.1283791, %v324_v16  ;;  %v240_v45 = vmul.f32 %v239_v20, %v918_v7 }
  0xcf   :  { %v577_v21 = vclamps-f32 %v151_v10, 1.0  ;;  %v331_v41 = vmul.f32 %v330_v22, %v873_v17  ;;  %624 = vrcp.f32 %v954_v31  ;;  %v964_v50 = vmul.f32 0.5, %v809_v39 }
  0xd0   :  { %v205_v52 = vadd.f32 1.1283791, %v204_v28  ;;  %v362_v60 = vmul.f32 %v361_v30, %v906_v54  ;;  %v967_v55 = vadd.f32 1.0, %v175_v29  ;;  %v398_v57 = vmul.f32 %v397_v34, %v939_v51 }
  0xd1   :  { %v434_v37 = vadd.f32 1.0, %v577_v21  ;;  %v332_v58 = vadd.f32 0.112945676, %v331_v41  ;;  %v210_v59 = vadd.f32 0.014752088, %v209_v42  ;;  %v286_v63 = vmul.f32 %v285_v46, %v816_v43 }
  0xd2   :  { %v368_v62 = vadd.f32 0.001143296, %v367_v33  ;;  %v975_v0 = vmul.f32 0.5, %v846_v61  ;;  %626 = vrcp.f32 %v967_v55  ;;  %v979_v39 = vmul.f32 %v165_v40, %v828_v49 }
  0xd3   :  { %v442_v47 = vmul.f32 %v434_v37, %v928_v19  ;;  %v972_v19 = vmul.f32 0.5, %v819_v44  ;;  %v982_v1 = vmul.f32 %v325_v53, %v854_v4  ;;  %v984_v3 = vadd.f32 0.05243302, %v240_v45 }
  0xd4   :  { %v333_v6 = vmul.f32 %v332_v58, %v873_v17  ;;  %v987_v56 = vadd.f32 0.18741608, %v362_v60  ;;  %v211_v43 = vmul.f32 %v210_v59, %v887_v26  ;;  %v369_v44 = vmul.f32 %v368_v62, %v906_v54 }
  0xd5   :  { %490 = vmatmul.f32.vlgmr.msra.gmra.mxu1 %v442_v47  ;;  %v247_v61 = vmul.f32 3.8918573e-05, %v918_v7  ;;  %v625_v46 = vpop.eup %624  ;;  %v993_v38 = vmul.f32 %v205_v52, %v867_v12  ;;  %v399_v49 = vadd.f32 0.0036580483, %v398_v57  ;;  %v407_v4 = vmul.f32 3.8918573e-05, %v939_v51 }
  0xd6   :  { %v334_v8 = vadd.f32 0.4994258, %v333_v6  ;;  %v298_v9 = vmul.f32 %v625_v46, %v954_v31  ;;  %vm302_vm4 = vweird.f32 %v954_v31  ;;  %v212_v10 = vadd.f32 0.112945676, %v211_v43 }
  0xd7   :  { %v370_v11 = vadd.f32 0.014752088, %v369_v44  ;;  %v308_v13 = vand.u32 2147483648, %v954_v31  ;;  %v248_v16 = vadd.f32 0.001143296, %v247_v61  ;;  %vm303_vm5 = vweird.f32 %v625_v46 }
  0xd8   :  { %v335_v15 = vmul.f32 %v334_v8, %v873_v17  ;;  %v408_v27 = vadd.f32 0.001143296, %v407_v4  ;;  %v627_v18 = vpop.eup %626  ;;  %v299_v20 = vsub.f32 1.0, %v298_v9  ;;  %v306_v12 = vand.u32 2147483647, %v954_v31  ;;  %vm304_vm6 = vmor %vm302_vm4, %vm303_vm5 }
  0xd9   :  { %v213_v21 = vmul.f32 %v212_v10, %v887_v26  ;;  %v371_v24 = vmul.f32 %v370_v11, %v906_v54  ;;  %v178_v25 = vmul.f32 %v627_v18, %v967_v55  ;;  %v249_v30 = vmul.f32 %v248_v16, %v918_v7 }
  0xda   :  { %v1004_v28 = vadd.f32 1.0, %v335_v15  ;;  %v300_v22 = vmul.f32 %v625_v46, %v299_v20  ;;  %v409_v34 = vmul.f32 %v408_v27, %v939_v51  ;;  %v309_v37 = vor.u32 1.1754944e-38, %v308_v13 }
  0xdb   :  { %v214_v32 = vadd.f32 0.4994258, %v213_v21  ;;  %v372_v17 = vadd.f32 0.112945676, %v371_v24  ;;  %v179_v29 = vsub.f32 1.0, %v178_v25  ;;  %v188_v42 = vand.u32 2147483648, %v967_v55 }
  0xdc   :  { %v186_v40 = vand.u32 2147483647, %v967_v55  ;;  %628 = vrcp.f32 %v1004_v28  ;;  %v301_v41 = vadd.f32 %v625_v46, %v300_v22  ;;  %vm183_vm7 = vweird.f32 %v627_v18 }
  0xdd   :  { %v215_v33 = vmul.f32 %v214_v32, %v887_v26  ;;  %v373_v53 = vmul.f32 %v372_v17, %v906_v54  ;;  %v180_v45 = vmul.f32 %v627_v18, %v179_v29  ;;  %v250_v47 = vadd.f32 0.014752088, %v249_v30 }
  0xde   :  { %v410_v52 = vadd.f32 0.014752088, %v409_v34  ;;  %v305_v60 = vsel %vm304_vm6, %v625_v46, %v301_v41  ;;  %vm307_vm8 = vcmp.eq.f32.partialorder %v306_v12, 8.507059e+37  ;;  %vm182_vm9 = vweird.f32 %v967_v55 }
  0xdf   :  { %v1016_v57 = vadd.f32 1.0, %v215_v33  ;;  %v374_v58 = vadd.f32 0.4994258, %v373_v53  ;;  %v310_v59 = vsel %vm307_vm8, %v309_v37, %v305_v60  ;;  %v181_v62 = vadd.f32 %v627_v18, %v180_v45  ;;  %vm184_vm10 = vmor %vm182_vm9, %vm183_vm7 }
  0xe0   :  { %v251_v26 = vmul.f32 %v250_v47, %v918_v7  ;;  %v311_v6 = vmul.f32 %v310_v59, %v286_v63  ;;  %v189_v43 = vor.u32 1.1754944e-38, %v188_v42  ;;  %v411_v31 = vmul.f32 %v410_v52, %v939_v51 }
  0xe1   :  { %630 = vrcp.f32 %v1016_v57  ;;  %v185_v61 = vsel %vm184_vm10, %v627_v18, %v181_v62  ;;  %vm187_vm11 = vcmp.eq.f32.partialorder %v186_v40, 8.507059e+37  ;;  %v375_v46 = vmul.f32 %v374_v58, %v906_v54 }
  0xe2   :  { %v629_v44 = vpop.eup %628  ;;  %v252_v8 = vadd.f32 0.112945676, %v251_v26  ;;  %v242_v4 = vmul.f32 %v984_v3, %v918_v7  ;;  %v581_v9 = vclamps-f32 %v311_v6, 1.0  ;;  %v190_v55 = vsel %vm187_vm11, %v189_v43, %v185_v61 }
  0xe3   :  { %v338_v10 = vmul.f32 %v629_v44, %v1004_v28  ;;  %v400_v63 = vmul.f32 %v399_v49, %v939_v51  ;;  %v191_v11 = vmul.f32 %v190_v55, %v979_v39  ;;  %v346_v13 = vand.u32 2147483647, %v1004_v28 }
  0xe4   :  { %v1029_v15 = vadd.f32 1.0, %v375_v46  ;;  %v438_v16 = vadd.f32 1.0, %v581_v9  ;;  %v253_v18 = vmul.f32 %v252_v8, %v918_v7  ;;  %v412_v20 = vadd.f32 0.112945676, %v411_v31 }
  0xe5   :  { %v339_v27 = vsub.f32 1.0, %v338_v10  ;;  %v364_v3 = vmul.f32 %v987_v56, %v906_v54  ;;  %v578_v12 = vclamps-f32 %v191_v11, 1.0  ;;  %v348_v21 = vand.u32 2147483648, %v1004_v28 }
  0xe6   :  { %632 = vrcp.f32 %v1029_v15  ;;  %v446_v39 = vmul.f32 %v438_v16, %v964_v50  ;;  %vm343_vm12 = vweird.f32 %v629_v44  ;;  %v254_v25 = vadd.f32 0.4994258, %v253_v18 }
  0xe7   :  { %v631_v49 = vpop.eup %630  ;;  %v340_v24 = vmul.f32 %v629_v44, %v339_v27  ;;  %v401_v30 = vadd.f32 0.05243302, %v400_v63  ;;  %v435_v22 = vadd.f32 1.0, %v578_v12  ;;  %vm342_vm13 = vweird.f32 %v1004_v28 }
  0xe8   :  { %v218_v32 = vmul.f32 %v631_v49, %v1016_v57  ;;  %502 = vmatmul.f32.vlgmr.msra.gmra.mxu3 %v446_v39  ;;  %vm347_vm14 = vcmp.eq.f32.partialorder %v346_v13, 8.507059e+37  ;;  %v255_v54 = vmul.f32 %v254_v25, %v918_v7  ;;  %v413_v56 = vmul.f32 %v412_v20, %v939_v51  ;;  %vm344_vm15 = vmor %vm342_vm13, %vm343_vm12 }
  0xe9   :  { %v341_v17 = vadd.f32 %v629_v44, %v340_v24  ;;  %v443_v34 = vmul.f32 %v435_v22, %v972_v19  ;;  %v349_v50 = vor.u32 1.1754944e-38, %v348_v21  ;;  %v226_v29 = vand.u32 2147483647, %v1016_v57 }
  0xea   :  { %v219_v37 = vsub.f32 1.0, %v218_v32  ;;  %v228_v41 = vand.u32 2147483648, %v1016_v57  ;;  %v1044_v28 = vadd.f32 1.0, %v255_v54  ;;  %v414_v42 = vadd.f32 0.4994258, %v413_v56 }
  0xeb   :  { %v345_v40 = vsel %vm344_vm15, %v629_v44, %v341_v17  ;;  %v243_v53 = vadd.f32 0.18741608, %v242_v4  ;;  %493 = vmatmul.f32.gmra.mxu1 %v443_v34  ;;  %vm223_vm0 = vweird.f32 %v631_v49  ;;  %v365_v52 = vadd.f32 1.1283791, %v364_v3 }
  0xec   :  { %v633_v33 = vpop.eup %632  ;;  %v350_v45 = vsel %vm347_vm14, %v349_v50, %v345_v40  ;;  %v220_v47 = vmul.f32 %v631_v49, %v219_v37  ;;  %634 = vrcp.f32 %v1044_v28  ;;  %v402_v58 = vmul.f32 %v401_v30, %v939_v51 }
  0xed   :  { %v351_v19 = vmul.f32 %v350_v45, %v982_v1  ;;  %v378_v60 = vmul.f32 %v633_v33, %v1029_v15  ;;  %vm222_vm1 = vweird.f32 %v1016_v57  ;;  %vm227_vm2 = vcmp.eq.f32.partialorder %v226_v29, 8.507059e+37 }
  0xee   :  { %v221_v59 = vadd.f32 %v631_v49, %v220_v47  ;;  %vm224_vm3 = vmor %vm222_vm1, %vm223_vm0  ;;  %v229_v26 = vor.u32 1.1754944e-38, %v228_v41  ;;  %v415_v43 = vmul.f32 %v414_v42, %v939_v51  ;;  %vm383_vm4 = vweird.f32 %v633_v33 }
  0xef   :  { %v582_v62 = vclamps-f32 %v351_v19, 1.0  ;;  %v379_v6 = vsub.f32 1.0, %v378_v60  ;;  %v386_v1 = vand.u32 2147483647, %v1029_v15  ;;  %v388_v44 = vand.u32 2147483648, %v1029_v15 }
  0xf0   :  { %v225_v31 = vsel %vm224_vm3, %v631_v49, %v221_v59  ;;  %v416_v4 = vadd.f32 1.0, %v415_v43  ;;  %v244_v9 = vmul.f32 %v243_v53, %v918_v7  ;;  %vm382_vm5 = vweird.f32 %v1029_v15 }
  0xf1   :  { %v439_v61 = vadd.f32 1.0, %v582_v62  ;;  %v230_v46 = vsel %vm227_vm2, %v229_v26, %v225_v31  ;;  %v380_v8 = vmul.f32 %v633_v33, %v379_v6  ;;  %vm384_vm6 = vmor %vm382_vm5, %vm383_vm4  ;;  %v389_v13 = vor.u32 1.1754944e-38, %v388_v44 }
  0xf2   :  { %v231_v57 = vmul.f32 %v230_v46, %v993_v38  ;;  %v635_v55 = vpop.eup %634  ;;  %636 = vrcp.f32 %v416_v4  ;;  %v366_v27 = vmul.f32 %v365_v52, %v891_v35  ;;  %v403_v18 = vadd.f32 0.18741608, %v402_v58 }
  0xf3   :  { %v447_v10 = vmul.f32 %v439_v61, %v975_v0  ;;  %v381_v63 = vadd.f32 %v633_v33, %v380_v8  ;;  %v258_v16 = vmul.f32 %v635_v55, %v1044_v28  ;;  %vm387_vm7 = vcmp.eq.f32.partialorder %v386_v1, 8.507059e+37 }
  0xf4   :  { %v579_v11 = vclamps-f32 %v231_v57, 1.0  ;;  %v100_v38 = vmul.f32 0.5, %v857_v5  ;;  %v245_v12 = vadd.f32 1.1283791, %v244_v9  ;;  %v268_v21 = vand.u32 2147483648, %v1044_v28 }
  0xf5   :  { %505 = vmatmul.f32.gmra.mxu3 %v447_v10  ;;  %v385_v7 = vsel %vm384_vm6, %v633_v33, %v381_v63  ;;  %v259_v3 = vsub.f32 1.0, %v258_v16  ;;  %vm263_vm8 = vweird.f32 %v635_v55  ;;  %v266_v24 = vand.u32 2147483647, %v1044_v28 }
  0xf6   :  { %v436_v20 = vadd.f32 1.0, %v579_v11  ;;  %v390_v0 = vsel %vm387_vm7, %v389_v13, %v385_v7  ;;  %v404_v35 = vmul.f32 %v403_v18, %v939_v51  ;;  %vm262_vm9 = vweird.f32 %v1044_v28 }
  0xf7   :  { %v391_v15 = vmul.f32 %v390_v0, %v366_v27  ;;  %v260_v39 = vmul.f32 %v635_v55, %v259_v3  ;;  %v104_v32 = vmul.f32 0.5, %v883_v23  ;;  %vm264_vm10 = vmor %vm262_vm9, %vm263_vm8  ;;  %v269_v54 = vor.u32 1.1754944e-38, %v268_v21 }
  0xf8   :  { %v444_v49 = vmul.f32 %v436_v20, %v100_v38  ;;  %v637_v25 = vpop.eup %636  ;;  %v246_v56 = vmul.f32 %v245_v12, %v902_v48  ;;  %vm267_vm11 = vcmp.eq.f32.partialorder %v266_v24, 8.507059e+37  ;;  %v405_v37 = vadd.f32 1.1283791, %v404_v35 }
  0xf9   :  { %v583_v30 = vclamps-f32 %v391_v15, 1.0  ;;  %v261_v22 = vadd.f32 %v635_v55, %v260_v39  ;;  %v418_v5 = vmul.f32 %v637_v25, %v416_v4  ;;  %v428_v51 = vand.u32 2147483648, %v416_v4 }
  0xfa   :  { %496 = vmatmul.f32.gmra.mxu1 %v444_v49  ;;  %vm423_vm12 = vweird.f32 %v637_v25  ;;  %v426_v33 = vand.u32 2147483647, %v416_v4  ;;  %vm422_vm13 = vweird.f32 %v416_v4  ;;  %v101_v23 = vmul.f32 0.5, %v894_v36  ;;  %v621_v36 = vld [vmem:[%s1081_s4] ss:$0 sm:$0xff]  ;;  %s664_s4 = smov [#allocation3]  }
  0xfb   :  { %v440_v17 = vadd.f32 1.0, %v583_v30  ;;  %v265_v34 = vsel %vm264_vm10, %v635_v55, %v261_v22  ;;  %v419_v50 = vsub.f32 1.0, %v418_v5  ;;  %vm424_vm14 = vmor %vm422_vm13, %vm423_vm12  ;;  %v429_v45 = vor.u32 1.1754944e-38, %v428_v51  ;;  %s563_s0 = sshll.u32 %s664_s4, 4  ;;  %s564_s0 = int_to_ptr.vmem [resolvable:$true] %s563_s0 }
  0xfc   :  { %v270_v40 = vsel %vm267_vm11, %v269_v54, %v265_v34  ;;  %v406_v48 = vmul.f32 %v405_v37, %v923_v14  ;;  %vm427_vm15 = vcmp.eq.f32.partialorder %v426_v33, 8.507059e+37  ;;  %v105_v62 = vmul.f32 0.5, %v915_v2 }
  0xfd   :  { %v448_v29 = vmul.f32 %v440_v17, %v104_v32  ;;  %v271_v41 = vmul.f32 %v270_v40, %v246_v56  ;;  %v420_v42 = vmul.f32 %v637_v25, %v419_v50 }
  0xff   :  { %508 = vmatmul.f32.gmra.mxu3 %v448_v29  ;;  %v580_v28 = vclamps-f32 %v271_v41, 1.0  ;;  %v421_v53 = vadd.f32 %v637_v25, %v420_v42 }
 0x101   :  { %v437_v47 = vadd.f32 1.0, %v580_v28  ;;  %v425_v52 = vsel %vm424_vm14, %v637_v25, %v421_v53 }
 0x102   :  { %v430_v19 = vsel %vm427_vm15, %v429_v45, %v425_v52 }
 0x103   :  { %v445_v60 = vmul.f32 %v437_v47, %v101_v23  ;;  %v431_v58 = vmul.f32 %v430_v19, %v406_v48 }
 0x105   :  { %499 = vmatmul.f32.gmra.mxu1 %v445_v60  ;;  %v584_v59 = vclamps-f32 %v431_v58, 1.0 }
 0x107   :  { %v441_v26 = vadd.f32 1.0, %v584_v59 }
 0x109   :  { %v449_v6 = vmul.f32 %v441_v26, %v105_v62 }
 0x10b   :  { %511 = vmatmul.f32.gmra.mxu3 %v449_v6 }
 0x152   :  { %v491_v43 = vpop.f32.mrf.mxu1 }
 0x153   :  { %v543_v31 = vadd.f32 %v621_v36, %v491_v43 }
 0x155   :  { %551 = vst [vmem:[#allocation3] sm:$0xff] %v543_v31 }
 0x168   :  { %v494_v14 = vpop.f32.mrf.mxu1 }
 0x169   :  { %v544_v1 = vadd.f32 %v621_v36, %v494_v14 }
 0x16b   :  { %552 = vst [vmem:[#allocation3 + $0x8] sm:$0xff] %v544_v1  ;;  %v503_v44 = vpop.f32.mrf.mxu3 }
 0x16c   :  { %v547_v61 = vadd.f32 %v621_v36, %v503_v44 }
 0x16e   :  { %555 = vst [vmem:[#allocation3 + $0x20] sm:$0xff] %v547_v61 }
 0x177   :  { %v497_v46 = vpop.f32.mrf.mxu1 }
 0x178   :  { %v545_v8 = vadd.f32 %v621_v36, %v497_v46  ;;  %v506_v4 = vpop.f32.mrf.mxu3 }
 0x179   :  { %v548_v2 = vadd.f32 %v621_v36, %v506_v4 }
 0x17a   :  { %553 = vst [vmem:[#allocation3 + $0x10] sm:$0xff] %v545_v8 }
 0x17b   :  { %556 = vst [vmem:[#allocation3 + $0x28] sm:$0xff] %v548_v2 }
 0x182   :  { %v509_v9 = vpop.f32.mrf.mxu3  ;;  %v500_v57 = vpop.f32.mrf.mxu1 }
 0x183   :  { %v549_v55 = vadd.f32 %v621_v36, %v509_v9  ;;  %v546_v10 = vadd.f32 %v621_v36, %v500_v57 }
 0x185   :  { %557 = vst [vmem:[#allocation3 + $0x30] sm:$0xff] %v549_v55 }
 0x186   :  { %554 = vst [vmem:[#allocation3 + $0x18] sm:$0xff] %v546_v10 }
 0x18e   :  { %v512_v63 = vpop.f32.mrf.mxu3 }
 0x18f   :  { %v550_v11 = vadd.f32 %v621_v36, %v512_v63 }
 0x191   :  { %558 = vst [vmem:[#allocation3 + $0x38] sm:$0xff] %v550_v11 }
 0x192   :  { %571 = dma.vmem_to_hbm [thread:$0]  %s564_s0, 1024, %s566_s24, [#allocation4], %s665_s25, %s665_s25, %s666_s2  }
 0x193   :  { %662 = dma.done.wait [#allocation4], 1024  }
 0x194   :  { %663 = vsyncadd [#allocation4], 4294966272 }
 0x195   :  { %576 = vsyncpa [#allocation4], 1 }

</bundles_post_ra>
